<compile_context>
chip_gen: v6e
topology: v6e:2x2x1
jax: 0.10.0
libtpu: 0.0.40
codegen_flags: <defaults>
</compile_context>

<pallas_src>
import functools

import jax
import jax.numpy as jnp
import numpy as np
from jax.experimental import pallas as pl
from jax.experimental.pallas import tpu as pltpu


def _round_up(v, m):
    return ((v + m - 1) // m) * m


def mlp_c51_kernel(x_ref, w1_ref, b1_ref, w2_ref, b2_ref, sup_ref, out_ref,
                   *, action_no, n_atoms):
    """matmul -> ReLU -> matmul -> per-action softmax-expectation, fully vectorized."""
    x = x_ref[...]                                                     # (bm, D_in)

    # Hidden layer + ReLU (MXU matmul, f32 accumulation).
    h = jnp.dot(x, w1_ref[...], preferred_element_type=jnp.float32) + b1_ref[...]
    h = jnp.maximum(h, 0.0)                                            # (bm, H)

    # Output head: logits over action_no * n_atoms.
    logits = jnp.dot(h, w2_ref[...], preferred_element_type=jnp.float32) + b2_ref[...]

    bm = logits.shape[0]
    logits3 = logits.reshape(bm, action_no, n_atoms)                   # (bm, A, n_atoms)

    # Numerically-stable softmax expectation without materializing probabilities:
    #   E[Q] = sum(e * support) / sum(e),  e = exp(logits - max)
    m = jnp.max(logits3, axis=-1, keepdims=True)
    e = jnp.exp(logits3 - m)
    sup = sup_ref[...].reshape(1, 1, n_atoms)                          # broadcast once
    numer = jnp.sum(e * sup, axis=-1)                                  # (bm, A)
    denom = jnp.sum(e, axis=-1)                                        # (bm, A)
    q = numer * pl.reciprocal(denom)                                   # exact (bm*A recips)

    # Lane-dense store: pad the A(=4) action columns out to the 128-lane slab width.
    pad_cols = out_ref.shape[-1] - action_no
    if pad_cols:
        q = jnp.pad(q, ((0, 0), (0, pad_cols)))
    out_ref[...] = q                                                   # unmasked vst


def mlp_c51_forward(x, w1, b1, w2, b2, support, *, action_no, n_atoms):
    """x: (B, ...) -> flattened inside; returns expected Q values (B, action_no)."""
    B = x.shape[0]
    x_flat = x.reshape(B, -1).astype(jnp.float32)                      # x.view(B, -1)
    D_in, H = w1.shape
    D_out = w2.shape[1]

    b1_row = b1.reshape(1, H)
    b2_row = b2.reshape(1, D_out)
    sup_row = support.reshape(1, n_atoms)

    # Output slab padded to a multiple of 128 lanes; wrapper slices back to action_no.
    out_pad = max(128, _round_up(action_no, 128))

    # Batch tiling: big tiles (VMEM headroom is huge), and when B is large make sure the
    # grid has >= 2 "parallel" steps so both TensorCores get work on v7x.
    if B <= 256:
        block_b = B                                                    # single step
    else:
        block_b = min(2048, _round_up(pl.cdiv(B, 2), 8))
    grid = (pl.cdiv(B, block_b),)

    kernel = functools.partial(mlp_c51_kernel, action_no=action_no, n_atoms=n_atoms)

    cost = pl.CostEstimate(
        flops=2 * B * (D_in * H + H * D_out),
        transcendentals=B * D_out,                                     # exp
        bytes_accessed=4 * (B * D_in + D_in * H + H + H * D_out + D_out
                            + n_atoms + B * out_pad),
    )

    out = pl.pallas_call(
        kernel,
        out_shape=jax.ShapeDtypeStruct((B, out_pad), jnp.float32),
        grid=grid,
        in_specs=[
            pl.BlockSpec((block_b, D_in), lambda i: (i, 0)),           # activations: tiled
            pl.BlockSpec((D_in, H), lambda i: (0, 0)),                 # weights: resident
            pl.BlockSpec((1, H), lambda i: (0, 0)),
            pl.BlockSpec((H, D_out), lambda i: (0, 0)),
            pl.BlockSpec((1, D_out), lambda i: (0, 0)),
            pl.BlockSpec((1, n_atoms), lambda i: (0, 0)),
        ],
        out_specs=pl.BlockSpec((block_b, out_pad), lambda i: (i, 0)),
        compiler_params=pltpu.CompilerParams(
            dimension_semantics=("parallel",)),                        # 2x on v7x megacore
        cost_estimate=cost,
    )(x_flat, w1, b1_row, w2, b2_row, sup_row)

    return out[:, :action_no]


def reference_forward(x, w1, b1, w2, b2, support, *, action_no, n_atoms):
    """Plain-JAX reference mirroring the PyTorch forward (default probs=log_probs=False)."""
    B = x.shape[0]
    xf = x.reshape(B, -1).astype(jnp.float32)
    h = jax.nn.relu(xf @ w1 + b1)
    qs = h @ w2 + b2
    logits = qs.reshape(B, action_no, n_atoms)
    probs = jax.nn.softmax(logits, axis=2)
    return jnp.sum(probs * support[None, None, :], axis=2)


if __name__ == "__main__":
    # Module config (matches MLP(action_no=4, layers=[32, 64], support=(-5., 5., 64)))
    action_no = 4
    layers = [32, 64]          # layers[0] is the (flattened) input dim
    support_lo, support_hi, n_atoms = -5.0, 5.0, 64
    in_dim, hidden = layers
    out_dim = action_no * n_atoms

    key = jax.random.PRNGKey(0)
    kx, k1, k2, k3, k4 = jax.random.split(key, 5)

    # Small input whose flatten matches in_dim: (B, 2, 4, 4) -> (B, 32)
    B = 8
    x = jax.random.normal(kx, (B, 2, 4, 4), dtype=jnp.float32)

    # Deterministic "Linear" parameters, stored as (in, out) for x @ W + b.
    w1 = jax.random.normal(k1, (in_dim, hidden), dtype=jnp.float32) * 0.1
    b1 = jax.random.normal(k2, (hidden,), dtype=jnp.float32) * 0.1
    w2 = jax.random.normal(k3, (hidden, out_dim), dtype=jnp.float32) * 0.1
    b2 = jax.random.normal(k4, (out_dim,), dtype=jnp.float32) * 0.1

    # Fixed (non-trainable) support, same as nn.Parameter(torch.linspace(*support)).
    support = jnp.linspace(support_lo, support_hi, n_atoms, dtype=jnp.float32)

    q_kernel = mlp_c51_forward(x, w1, b1, w2, b2, support,
                               action_no=action_no, n_atoms=n_atoms)
    q_kernel = jax.block_until_ready(q_kernel)

    q_ref = reference_forward(x, w1, b1, w2, b2, support,
                              action_no=action_no, n_atoms=n_atoms)

    assert q_kernel.shape == (B, action_no)
    # Exact reciprocal now used; remaining differences are MXU f32 accumulation order.
    np.testing.assert_allclose(np.asarray(q_kernel), np.asarray(q_ref),
                               rtol=1e-4, atol=1e-5)

    # TODO(synk): probs / log_probs return branches (softmax / log-softmax outputs)
    # not exposed by this wrapper; only the default expected-Q path is implemented.
    print("KERNEL_OK")
</pallas_src>

<mosaic_0001>
module attributes {stable_mosaic.version = 11 : i64} {
  func.func @mlp_c51_kernel(%arg0: i32, %arg1: memref<8x32xf32, #tpu.memory_space<vmem>>, %arg2: memref<32x64xf32, #tpu.memory_space<vmem>>, %arg3: memref<1x64xf32, #tpu.memory_space<vmem>>, %arg4: memref<64x256xf32, #tpu.memory_space<vmem>>, %arg5: memref<1x256xf32, #tpu.memory_space<vmem>>, %arg6: memref<1x64xf32, #tpu.memory_space<vmem>>, %arg7: memref<8x128xf32, #tpu.memory_space<vmem>>) attributes {dimension_semantics = [#tpu.dimension_semantics<parallel>], iteration_bounds = array<i64: 1>, scalar_prefetch = 0 : i64, scratch_operands = 0 : i64, tpu.core_type = #tpu.core_type<tc>, window_params = [{transform_indices = @transform_0, window_bounds = array<i64: 8, 32>}, {pipeline_mode = #tpu.pipeline_mode<synchronous>, transform_indices = @transform_1, window_bounds = array<i64: 32, 64>}, {pipeline_mode = #tpu.pipeline_mode<synchronous>, transform_indices = @transform_2, window_bounds = array<i64: 1, 64>}, {pipeline_mode = #tpu.pipeline_mode<synchronous>, transform_indices = @transform_3, window_bounds = array<i64: 64, 256>}, {pipeline_mode = #tpu.pipeline_mode<synchronous>, transform_indices = @transform_4, window_bounds = array<i64: 1, 256>}, {pipeline_mode = #tpu.pipeline_mode<synchronous>, transform_indices = @transform_5, window_bounds = array<i64: 1, 64>}, {transform_indices = @transform_6, window_bounds = array<i64: 8, 128>}]} {
    %c0 = arith.constant 0 : index
    %c0_0 = arith.constant 0 : index
    %0 = vector.load %arg1[%c0, %c0_0] : memref<8x32xf32, #tpu.memory_space<vmem>>, vector<8x32xf32>
    %c0_1 = arith.constant 0 : index
    %c0_2 = arith.constant 0 : index
    %1 = vector.load %arg2[%c0_1, %c0_2] : memref<32x64xf32, #tpu.memory_space<vmem>>, vector<32x64xf32>
    %cst = arith.constant dense<0.000000e+00> : vector<8x64xf32>
    %2 = tpu.matmul %0, %1, %cst {dimension_numbers = #tpu.dot_dimension_numbers<[1], [0], [0], [1], [0, 0, 1, 1], [], []>} : vector<8x32xf32>, vector<32x64xf32>, vector<8x64xf32> -> vector<8x64xf32>
    %c0_3 = arith.constant 0 : index
    %c0_4 = arith.constant 0 : index
    %3 = vector.load %arg3[%c0_3, %c0_4] : memref<1x64xf32, #tpu.memory_space<vmem>>, vector<1x64xf32>
    %4 = vector.broadcast %3 : vector<1x64xf32> to vector<8x64xf32>
    %5 = arith.addf %2, %4 : vector<8x64xf32>
    %cst_5 = arith.constant 0.000000e+00 : f32
    %6 = vector.broadcast %cst_5 : f32 to vector<8x64xf32>
    %7 = arith.maximumf %5, %6 : vector<8x64xf32>
    %c0_6 = arith.constant 0 : index
    %c0_7 = arith.constant 0 : index
    %8 = vector.load %arg4[%c0_6, %c0_7] : memref<64x256xf32, #tpu.memory_space<vmem>>, vector<64x256xf32>
    %cst_8 = arith.constant dense<0.000000e+00> : vector<8x256xf32>
    %9 = tpu.matmul %7, %8, %cst_8 {dimension_numbers = #tpu.dot_dimension_numbers<[1], [0], [0], [1], [0, 0, 1, 1], [], []>} : vector<8x64xf32>, vector<64x256xf32>, vector<8x256xf32> -> vector<8x256xf32>
    %c0_9 = arith.constant 0 : index
    %c0_10 = arith.constant 0 : index
    %10 = vector.load %arg5[%c0_9, %c0_10] : memref<1x256xf32, #tpu.memory_space<vmem>>, vector<1x256xf32>
    %11 = vector.broadcast %10 : vector<1x256xf32> to vector<8x256xf32>
    %12 = arith.addf %9, %11 : vector<8x256xf32>
    %13 = vector.shape_cast %12 : vector<8x256xf32> to vector<8x4x64xf32>
    %cst_11 = arith.constant dense<0xFF800000> : vector<8x4xf32>
    %14 = vector.multi_reduction <maximumf>, %13, %cst_11 [2] : vector<8x4x64xf32> to vector<8x4xf32>
    %15 = vector.shape_cast %14 : vector<8x4xf32> to vector<8x4x1xf32>
    %16 = vector.broadcast %15 : vector<8x4x1xf32> to vector<8x4x64xf32>
    %17 = arith.subf %13, %16 : vector<8x4x64xf32>
    %18 = math.exp %17 : vector<8x4x64xf32>
    %c0_12 = arith.constant 0 : index
    %c0_13 = arith.constant 0 : index
    %19 = vector.load %arg6[%c0_12, %c0_13] : memref<1x64xf32, #tpu.memory_space<vmem>>, vector<1x64xf32>
    %20 = vector.shape_cast %19 : vector<1x64xf32> to vector<1x1x64xf32>
    %21 = vector.broadcast %20 : vector<1x1x64xf32> to vector<8x4x64xf32>
    %22 = arith.mulf %18, %21 : vector<8x4x64xf32>
    %cst_14 = arith.constant dense<0.000000e+00> : vector<8x4xf32>
    %23 = vector.multi_reduction <add>, %22, %cst_14 [2] : vector<8x4x64xf32> to vector<8x4xf32>
    %cst_15 = arith.constant dense<0.000000e+00> : vector<8x4xf32>
    %24 = vector.multi_reduction <add>, %18, %cst_15 [2] : vector<8x4x64xf32> to vector<8x4xf32>
    %25 = tpu.reciprocal %24 : vector<8x4xf32> -> vector<8x4xf32>
    %26 = arith.mulf %23, %25 : vector<8x4xf32>
    %c0_i32 = arith.constant 0 : i32
    %27 = arith.sitofp %c0_i32 : i32 to f32
    %28 = vector.broadcast %27 : f32 to vector<8x124xf32>
    %29 = tpu.concatenate %26, %28 in 1 : vector<8x4xf32>, vector<8x124xf32> -> vector<8x128xf32>
    %c0_16 = arith.constant 0 : index
    %c0_17 = arith.constant 0 : index
    %30 = vector.load %arg7[%c0_16, %c0_17] : memref<8x128xf32, #tpu.memory_space<vmem>>, vector<8x128xf32>
    tpu.vector_store %arg7[%c0_16, %c0_17], %29 {strides = array<i32>} : memref<8x128xf32, #tpu.memory_space<vmem>>, vector<8x128xf32>,
    return
  }
  func.func @transform_0(%arg0: i32) -> (i32, i32) {
    %c0_i32 = arith.constant 0 : i32
    %c0_i32_0 = arith.constant 0 : i32
    return %arg0, %c0_i32 : i32, i32
  }
  func.func @transform_1(%arg0: i32) -> (i32, i32) {
    %c0_i32 = arith.constant 0 : i32
    %c0_i32_0 = arith.constant 0 : i32
    %c0_i32_1 = arith.constant 0 : i32
    return %c0_i32, %c0_i32_0 : i32, i32
  }
  func.func @transform_2(%arg0: i32) -> (i32, i32) {
    %c0_i32 = arith.constant 0 : i32
    %c0_i32_0 = arith.constant 0 : i32
    %c0_i32_1 = arith.constant 0 : i32
    return %c0_i32, %c0_i32_0 : i32, i32
  }
  func.func @transform_3(%arg0: i32) -> (i32, i32) {
    %c0_i32 = arith.constant 0 : i32
    %c0_i32_0 = arith.constant 0 : i32
    %c0_i32_1 = arith.constant 0 : i32
    return %c0_i32, %c0_i32_0 : i32, i32
  }
  func.func @transform_4(%arg0: i32) -> (i32, i32) {
    %c0_i32 = arith.constant 0 : i32
    %c0_i32_0 = arith.constant 0 : i32
    %c0_i32_1 = arith.constant 0 : i32
    return %c0_i32, %c0_i32_0 : i32, i32
  }
  func.func @transform_5(%arg0: i32) -> (i32, i32) {
    %c0_i32 = arith.constant 0 : i32
    %c0_i32_0 = arith.constant 0 : i32
    %c0_i32_1 = arith.constant 0 : i32
    return %c0_i32, %c0_i32_0 : i32, i32
  }
  func.func @transform_6(%arg0: i32) -> (i32, i32) {
    %c0_i32 = arith.constant 0 : i32
    %c0_i32_0 = arith.constant 0 : i32
    return %arg0, %c0_i32 : i32, i32
  }
}

</mosaic_0001>

<bundles_post_ra>
// kernel: tpu_custom_call.1
= control target key start
LH: loop header
LB: loop body
LE: loop exit
PB: predicated region body
PF: predicated region fallthrough
CT: control target
= control target key end

     0   :  { %11 = vsyncpa [#allocation3], 0  ;;  %s796_s0 = inlined_call_operand.hbm [shape: f32[8,32], index: 0, kind: input, shape index: {}]   ;;  %s797_s1 = inlined_call_operand.hbm [shape: f32[32,64], index: 1, kind: input, shape index: {}]   ;;  %s798_s2 = inlined_call_operand.vmem [shape: f32[1,64], index: 2, kind: input, shape index: {}]   ;;  %s799_s3 = inlined_call_operand.hbm [shape: f32[64,256], index: 3, kind: input, shape index: {}]   ;;  %s800_s4 = inlined_call_operand.vmem [shape: f32[1,256], index: 4, kind: input, shape index: {}]   ;;  %s801_s5 = inlined_call_operand.vmem [shape: f32[1,64], index: 5, kind: input, shape index: {}]   ;;  %s802_s6 = inlined_call_operand.hbm [shape: f32[8,128], index: 6, kind: output, shape index: {}]  }
   0x1   :  { %12 = vsyncpa [#allocation6], 0 }
   0x2   :  { %13 = vsyncpa [#allocation4], 0  ;;  %s684_s21 = smov [#allocation5]  }
   0x3   :  { %s29_s22 = sshll.u32 %s684_s21, 4  ;;  %s30_s22 = int_to_ptr.vmem [resolvable:$true] %s29_s22 }
   0x4   :  { %s606_s23 = scalar_lea.vmem %s30_s22, 512  ;;  %p611_p1 = scmp.lt.s32.totalorder %s30_s22, %s30_s22 }
   0x5   :  { %p607_p0 = scmp.ne.s32.totalorder %s30_s22, %s606_s23  ;;  %p612_p2 = scmp.lt.s32.totalorder %s606_s23, %s606_s23 }
   0x7   :  { %p613_p3 = por %p612_p2, %p611_p1 }
   0x9   :  { %p614_p4 = pnand %p613_p3, %p607_p0 }
   0xb   :  { %617 = shalt.err (!%p614_p4)
}
   0xc   :  { %s685_s24 = smov 128   ;;  %s686_s25 = smov 8  }
   0xd   :  { %35 = dma.hbm_to_vmem [thread:$0]  %s797_s1, 512, %s30_s22, [#allocation6], %s685_s24, %s685_s24, %s686_s25  }
   0xe   :  { %s687_s28 = smov [#allocation2]   ;;  %s688_s30 = smov [#allocation7]  }
   0xf   :  { %s20_s29 = sshll.u32 %s687_s28, 4  ;;  %s43_s7 = sshll.u32 %s688_s30, 4  ;;  %s21_s29 = int_to_ptr.vmem [resolvable:$true] %s20_s29  ;;  %s44_s7 = int_to_ptr.vmem [resolvable:$true] %s43_s7 }
  0x10   :  { %s626_s8 = scalar_lea.vmem %s21_s29, 128  ;;  %p631_p6 = scmp.lt.s32.totalorder %s21_s29, %s21_s29 }
  0x11   :  { %p627_p5 = scmp.ne.s32.totalorder %s21_s29, %s626_s8  ;;  %p632_p7 = scmp.lt.s32.totalorder %s626_s8, %s626_s8 }
  0x13   :  { %p633_p8 = por %p632_p7, %p631_p6 }
  0x15   :  { %p634_p9 = pnand %p633_p8, %p627_p5 }
  0x17   :  { %637 = shalt.err (!%p634_p9)
}
  0x18   :  { %23 = dma.hbm_to_vmem [thread:$0]  %s796_s0, 128, %s21_s29, [#allocation3]  }
  0x19   :  { %s646_s11 = scalar_lea.vmem %s44_s7, 2048  ;;  %p651_p11 = scmp.lt.s32.totalorder %s44_s7, %s44_s7 }
  0x1a   :  { %p647_p10 = scmp.ne.s32.totalorder %s44_s7, %s646_s11  ;;  %p652_p12 = scmp.lt.s32.totalorder %s646_s11, %s646_s11 }
  0x1c   :  { %p653_p13 = por %p652_p12, %p651_p11 }
  0x1e   :  { %p654_p0 = pnand %p653_p13, %p647_p10 }
  0x20   :  { %657 = shalt.err (!%p654_p0)
}
  0x21   :  { %s689_s1 = smov 256   ;;  %s690_s12 = smov 16  }
  0x22   :  { %49 = dma.hbm_to_vmem [thread:$0]  %s799_s3, 2048, %s44_s7, [#allocation6], %s689_s1, %s689_s1, %s690_s12  }
  0x23   :  { %678 = dma.done.wait [#allocation3], 128  }
  0x24   :  { %679 = vsyncadd [#allocation3], 4294967168 }
  0x25   :  { %680 = dma.done.wait [#allocation6], 2560  }
  0x26   :  { %681 = vsyncadd [#allocation6], 4294964736  ;;  %v691_v0 = vmov 0.0   ;;  %vm692_vm0 = vmmov 0   ;;  %v67_v1 = vld [vmem:[#allocation5 + $0x18] sm:$0xff]  ;;  %v66_v2 = vld [vmem:[#allocation5 + $0x10] sm:$0xff]  ;;  %v168_v27 = vlaneseq }
  0x27   :  { %542 = vmatprep.subr.mxu0 %v691_v0  ;;  %550 = vmatprep.mubr.msk.f32.mxu0 %vm692_vm0, %v691_v0  ;;  %v65_v3 = vld [vmem:[#allocation5 + $0x8] sm:$0xff]  ;;  %v165_v4 = vld [vmem:[#allocation7 + $0x78] sm:$0xff]  ;;  %v164_v5 = vld [vmem:[#allocation7 + $0x70] sm:$0xff]  ;;  %vm75_vm1 = vcmask 261120   ;;  %vm178_vm2 = vcmask 523264   ;;  %vm329_vm3 = vcmask 519168  }
  0x28   :  { %246 = vmatprep.mubr.f32.mxu1 %v691_v0  ;;  %543 = vmatpush3.msra.mxu0 %v67_v1  ;;  %v163_v6 = vld [vmem:[#allocation7 + $0x68] sm:$0xff]  ;;  %v162_v7 = vld [vmem:[#allocation7 + $0x60] sm:$0xff]  ;;  %v161_v8 = vld [vmem:[#allocation7 + $0x58] sm:$0xff]  ;;  %v751_v28 = vshrl.u32 %v168_v27, 7  ;;  %v694_v40 = vmov 1983009808  }
  0x29   :  { %544 = vmatprep.subr.mxu0 %v691_v0  ;;  %198 = vmatprep.subr.mxu1 %v165_v4  ;;  %v64_v9 = vld [vmem:[#allocation5] sm:$0xff]  ;;  %v160_v10 = vld [vmem:[#allocation7 + $0x50] sm:$0xff]  ;;  %v63_v11 = vld [vmem:[#allocation2] sm:$0xff]  ;;  %v264_v41 = vunpack.c.l.s4 %v694_v40  ;;  %v695_v42 = vmov 1934713408   ;;  %vm499_vm4 = vcmask 1041409  }
  0x2a   :  { %545 = vmatpush3.msra.mxu0 %v66_v2  ;;  %199 = vmatpush1.msra.mxu1 %v164_v5  ;;  %v159_v12 = vld [vmem:[#allocation7 + $0x48] sm:$0xff]  ;;  %v158_v13 = vld [vmem:[#allocation7 + $0x40] sm:$0xff]  ;;  %v157_v14 = vld [vmem:[#allocation7 + $0x38] sm:$0xff]  ;;  %v170_v29 = vsub.s32 0, %v751_v28  ;;  %v174_v31 = vsub.s32 1, %v751_v28  ;;  %v296_v43 = vunpack.c.l.s4 %v695_v42  ;;  %vm501_vm5 = vcmask 1042434  }
  0x2b   :  { %546 = vmatprep.subr.mxu0 %v691_v0  ;;  %200 = vmatprep.subr.mxu1 %v163_v6  ;;  %v156_v15 = vld [vmem:[#allocation7 + $0x30] sm:$0xff]  ;;  %v155_v16 = vld [vmem:[#allocation7 + $0x28] sm:$0xff]  ;;  %v154_v17 = vld [vmem:[#allocation7 + $0x20] sm:$0xff]  ;;  %v265_v44 = vunpack.c.0.s8 %v264_v41  ;;  %vm503_vm6 = vcmask 1043459   ;;  %vm505_vm7 = vcmask 1044484   ;;  %vm507_vm8 = vcmask 1045509  }
  0x2c   :  { %547 = vmatpush3.msra.mxu0 %v65_v3  ;;  %201 = vmatpush1.msra.mxu1 %v162_v7  ;;  %v153_v18 = vld [vmem:[#allocation7 + $0x18] sm:$0xff]  ;;  %v152_v19 = vld [vmem:[#allocation7 + $0x10] sm:$0xff]  ;;  %v151_v20 = vld [vmem:[#allocation7 + $0x8] sm:$0xff]  ;;  %v297_v46 = vunpack.c.0.s8 %v296_v43  ;;  %vm509_vm9 = vcmask 1046534   ;;  %vm511_vm10 = vcmask 1047559   ;;  %vm514_vm11 = vcmask 31744  }
  0x2d   :  { %548 = vmatprep.subr.mxu0 %v691_v0  ;;  %202 = vmatprep.subr.mxu1 %v161_v8  ;;  %v150_v21 = vld [vmem:[#allocation7] sm:$0xff]  ;;  %v533_v22 = vld [vmem:[%s798_s2] ss:$0 sm:$0xff]  ;;  %s693_s2 = smov 64   ;;  %v268_v47 = vsub.s32 %v265_v44, %v751_v28 }
  0x2e   :  { %549 = vmatpush3.msra.mxu0 %v64_v9  ;;  %203 = vmatpush1.msra.mxu1 %v160_v10  ;;  %v166_v30 = vld [vmem:[%s800_s4] sm:$0x3]  ;;  %v300_v51 = vsub.s32 %v297_v46, %v751_v28 }
  0x2f   :  { %551 = vmatmul.mubr.msk.f32.vlgmr.msra.gmra.mxu0 %vm75_vm1, %v63_v11  ;;  %204 = vmatprep.subr.mxu1 %v159_v12  ;;  %v171_v32 = vrot.slane %v166_v30, %v170_v29  ;;  %v175_v33 = vrot.slane %v166_v30, %v174_v31 }
  0x30   :  { %205 = vmatpush1.msra.mxu1 %v158_v13 }
  0x31   :  { %206 = vmatprep.subr.mxu1 %v157_v14 }
  0x32   :  { %207 = vmatpush1.msra.mxu1 %v156_v15 }
  0x33   :  { %208 = vmatprep.subr.mxu1 %v155_v16 }
  0x34   :  { %209 = vmatpush1.msra.mxu1 %v154_v17 }
  0x35   :  { %210 = vmatprep.subr.mxu1 %v153_v18 }
  0x36   :  { %211 = vmatpush1.msra.mxu1 %v152_v19 }
  0x37   :  { %212 = vmatprep.subr.mxu1 %v151_v20 }
  0x38   :  { %213 = vmatpush1.msra.mxu1 %v150_v21 }
  0xef   :  { %v145_v23 = vpop.f32.mrf.mxu0 }
  0xf0   :  { %v146_v24 = vadd.f32 %v533_v22, %v145_v23 }
  0xf1   :  { %v552_v25 = vpop.f32.mrf.mxu0 }
  0xf2   :  { %v149_v26 = vmax.f32 %v146_v24, 0.0 }
  0xf4   :  { %535 = vmatmul.mubr.msk.f32.vlgmr.msra.gmra.mxu1 %vm178_vm2, %v149_v26 }
 0x1b4   :  { %v248_v34 = vpop.f32.mrf.mxu1 }
 0x1b5   :  { %v249_v35 = vadd.f32 %v248_v34, %v171_v32 }
 0x1b6   :  { %v250_v36 = vpop.f32.mrf.mxu1 }
 0x1b7   :  { %v251_v37 = vadd.f32 %v250_v36, %v175_v33  ;;  %254 = vrot.lane.b32.xlu0 %v249_v35, %s693_s2 }
 0x1b9   :  { %v261_v38 = vcombine.low %v249_v35, %v251_v37  ;;  %v262_v39 = vcombine.high %v249_v35, %v251_v37 }
 0x1bb   :  { %258 = vrot.lane.b32.xlu0 %v251_v37, %s693_s2  ;;  %v269_v52 = vrot.slane %v261_v38, %v268_v47  ;;  %v276_v53 = vrot.slane %v262_v39, %v268_v47 }
 0x229   :  { %v255_v45 = vpop.permute.xlu0 %254 }
 0x22d   :  { %v259_v48 = vpop.permute.xlu0 %258 }
 0x22e   :  { %v277_v49 = vcombine.low %v255_v45, %v259_v48  ;;  %v278_v50 = vcombine.high %v255_v45, %v259_v48 }
 0x230   :  { %v285_v54 = vrot.slane %v277_v49, %v268_v47  ;;  %v292_v55 = vrot.slane %v278_v50, %v268_v47  ;;  %v536_v47 = vld [vmem:[%s801_s5] ss:$0 sm:$0xff]  ;;  %s696_s5 = smov [#allocation8]  }
 0x231   :  { %s523_s18 = sshll.u32 %s696_s5, 4  ;;  %s524_s18 = int_to_ptr.vmem [resolvable:$true] %s523_s18 }
 0x232   :  { %v293_v56 = vcombine.low %v269_v52, %v285_v54  ;;  %v294_v57 = vcombine.high %v269_v52, %v285_v54  ;;  %v309_v58 = vcombine.low %v276_v53, %v292_v55  ;;  %v310_v61 = vcombine.high %v276_v53, %v292_v55  ;;  %s658_s19 = scalar_lea.vmem %s524_s18, 128  ;;  %p663_p2 = scmp.lt.s32.totalorder %s524_s18, %s524_s18 }
 0x233   :  { %p659_p1 = scmp.ne.s32.totalorder %s524_s18, %s658_s19  ;;  %p664_p3 = scmp.lt.s32.totalorder %s658_s19, %s658_s19 }
 0x234   :  { %v308_v59 = vrot.slane %v294_v57, %v300_v51  ;;  %v301_v60 = vrot.slane %v293_v56, %v300_v51  ;;  %v317_v1 = vrot.slane %v309_v58, %v300_v51  ;;  %v324_v3 = vrot.slane %v310_v61, %v300_v51 }
 0x235   :  { %p665_p4 = por %p664_p3, %p663_p2 }
 0x236   :  { %v336_v62 = vsel %vm329_vm3, %v308_v59, -inf  ;;  %v330_v63 = vsel %vm329_vm3, %v301_v60, -inf  ;;  %v342_v2 = vsel %vm329_vm3, %v317_v1, -inf  ;;  %v348_v4 = vsel %vm329_vm3, %v324_v3, -inf }
 0x237   :  { %337 = vmax.xlane.f32.xlu0 %v336_v62  ;;  %331 = vmax.xlane.f32.xlu1 %v330_v63  ;;  %v325_v5 = vcombine.high %v301_v60, %v691_v0  ;;  %v326_v7 = vcombine.high %v308_v59, %v691_v0  ;;  %v327_v9 = vcombine.high %v317_v1, %v691_v0  ;;  %p666_p5 = pnand %p665_p4, %p659_p1 }
 0x238   :  { %v328_v11 = vcombine.high %v324_v3, %v691_v0 }
 0x239   :  { %v333_v6 = vsel %vm329_vm3, %v325_v5, -inf  ;;  %v339_v8 = vsel %vm329_vm3, %v326_v7, -inf  ;;  %v345_v10 = vsel %vm329_vm3, %v327_v9, -inf }
 0x23a   :  { %v351_v12 = vsel %vm329_vm3, %v328_v11, -inf }
 0x23b   :  { %343 = vmax.xlane.f32.xlu1 %v342_v2 }
 0x23f   :  { %349 = vmax.xlane.f32.xlu1 %v348_v4 }
 0x243   :  { %334 = vmax.xlane.f32.xlu1 %v333_v6 }
 0x247   :  { %340 = vmax.xlane.f32.xlu1 %v339_v8 }
 0x24b   :  { %346 = vmax.xlane.f32.xlu1 %v345_v10 }
 0x24f   :  { %352 = vmax.xlane.f32.xlu1 %v351_v12 }
 0x2c0   :  { %v338_v13 = vpop.xlane.xlu0 %337  ;;  %v332_v14 = vpop.xlane.xlu1 %331 }
 0x2c1   :  { %v356_v15 = vsub.f32 %v308_v59, %v338_v13  ;;  %v354_v16 = vsub.f32 %v301_v60, %v332_v14 }
 0x2c3   :  { %v362_v17 = vmul.f32 1.442695, %v354_v16  ;;  %v366_v18 = vmul.f32 1.442695, %v356_v15  ;;  %v466_v16 = vand.u32 127, %v168_v27 }
 0x2c4   :  { %v344_v19 = vpop.xlane.xlu1 %343 }
 0x2c5   :  { %v358_v20 = vsub.f32 %v317_v1, %v344_v19  ;;  %566 = vpow2.f32 %v362_v17 }
 0x2c6   :  { %568 = vpow2.f32 %v366_v18 }
 0x2c7   :  { %v370_v21 = vmul.f32 1.442695, %v358_v20  ;;  %v469_v20 = vsub.s32 %v466_v16, %v751_v28 }
 0x2c8   :  { %v350_v22 = vpop.xlane.xlu1 %349 }
 0x2c9   :  { %570 = vpow2.f32 %v370_v21  ;;  %v360_v23 = vsub.f32 %v324_v3, %v350_v22 }
 0x2cb   :  { %v374_v26 = vmul.f32 1.442695, %v360_v23 }
 0x2cc   :  { %v335_v24 = vpop.xlane.xlu1 %334 }
 0x2cd   :  { %v355_v0 = vsub.f32 %v325_v5, %v335_v24 }
 0x2cf   :  { %v364_v25 = vmul.f32 1.442695, %v355_v0 }
 0x2d0   :  { %v341_v29 = vpop.xlane.xlu1 %340 }
 0x2d1   :  { %572 = vpow2.f32 %v364_v25  ;;  %v357_v30 = vsub.f32 %v326_v7, %v341_v29 }
 0x2d2   :  { %v567_v31 = vpop.eup %566  ;;  %574 = vpow2.f32 %v374_v26 }
 0x2d3   :  { %v368_v32 = vmul.f32 1.442695, %v357_v30  ;;  %v417_v33 = vsel %vm329_vm3, %v567_v31, 0.0  ;;  %v569_v35 = vpop.eup %568  ;;  %v385_v51 = vmul.f32 %v567_v31, %v536_v47 }
 0x2d4   :  { %v347_v34 = vpop.xlane.xlu1 %346  ;;  %418 = vadd.xlane.f32.xlu1 %v417_v33  ;;  %v423_v38 = vsel %vm329_vm3, %v569_v35, 0.0  ;;  %v387_v55 = vmul.f32 %v569_v35, %v536_v47 }
 0x2d5   :  { %576 = vpow2.f32 %v368_v32  ;;  %v359_v36 = vsub.f32 %v327_v9, %v347_v34  ;;  %v393_v54 = vsel %vm329_vm3, %v385_v51, 0.0 }
 0x2d6   :  { %v571_v40 = vpop.eup %570  ;;  %v399_v59 = vsel %vm329_vm3, %v387_v55, 0.0 }
 0x2d7   :  { %v372_v37 = vmul.f32 1.442695, %v359_v36  ;;  %v429_v43 = vsel %vm329_vm3, %v571_v40, 0.0  ;;  %v389_v60 = vmul.f32 %v571_v40, %v536_v47 }
 0x2d8   :  { %v353_v39 = vpop.xlane.xlu1 %352  ;;  %424 = vadd.xlane.f32.xlu1 %v423_v38 }
 0x2d9   :  { %578 = vpow2.f32 %v372_v37  ;;  %v361_v41 = vsub.f32 %v328_v11, %v353_v39  ;;  %v405_v63 = vsel %vm329_vm3, %v389_v60, 0.0 }
 0x2db   :  { %v376_v42 = vmul.f32 1.442695, %v361_v41 }
 0x2dc   :  { %430 = vadd.xlane.f32.xlu1 %v429_v43 }
 0x2dd   :  { %580 = vpow2.f32 %v376_v42 }
 0x2de   :  { %v573_v44 = vpop.eup %572 }
 0x2df   :  { %v420_v45 = vsel %vm329_vm3, %v573_v44, 0.0  ;;  %v575_v46 = vpop.eup %574  ;;  %v386_v58 = vmul.f32 %v573_v44, %v536_v47 }
 0x2e0   :  { %421 = vadd.xlane.f32.xlu1 %v420_v45  ;;  %v435_v50 = vsel %vm329_vm3, %v575_v46, 0.0  ;;  %v391_v1 = vmul.f32 %v575_v46, %v536_v47 }
 0x2e1   :  { %v396_v61 = vsel %vm329_vm3, %v386_v58, 0.0 }
 0x2e2   :  { %v577_v48 = vpop.eup %576  ;;  %v411_v4 = vsel %vm329_vm3, %v391_v1, 0.0 }
 0x2e3   :  { %v426_v49 = vsel %vm329_vm3, %v577_v48, 0.0  ;;  %v388_v62 = vmul.f32 %v577_v48, %v536_v47 }
 0x2e4   :  { %427 = vadd.xlane.f32.xlu0 %v426_v49  ;;  %436 = vadd.xlane.f32.xlu1 %v435_v50 }
 0x2e5   :  { %v402_v2 = vsel %vm329_vm3, %v388_v62, 0.0 }
 0x2e6   :  { %v579_v52 = vpop.eup %578 }
 0x2e7   :  { %v432_v53 = vsel %vm329_vm3, %v579_v52, 0.0  ;;  %v390_v3 = vmul.f32 %v579_v52, %v536_v47 }
 0x2e8   :  { %433 = vadd.xlane.f32.xlu0 %v432_v53  ;;  %394 = vadd.xlane.f32.xlu1 %v393_v54 }
 0x2e9   :  { %v408_v5 = vsel %vm329_vm3, %v390_v3, 0.0 }
 0x2ea   :  { %v581_v56 = vpop.eup %580 }
 0x2eb   :  { %v438_v57 = vsel %vm329_vm3, %v581_v56, 0.0  ;;  %v392_v6 = vmul.f32 %v581_v56, %v536_v47 }
 0x2ec   :  { %439 = vadd.xlane.f32.xlu0 %v438_v57  ;;  %400 = vadd.xlane.f32.xlu1 %v399_v59 }
 0x2ed   :  { %v414_v7 = vsel %vm329_vm3, %v392_v6, 0.0 }
 0x2f0   :  { %397 = vadd.xlane.f32.xlu0 %v396_v61  ;;  %406 = vadd.xlane.f32.xlu1 %v405_v63 }
 0x2f4   :  { %403 = vadd.xlane.f32.xlu0 %v402_v2  ;;  %412 = vadd.xlane.f32.xlu1 %v411_v4 }
 0x2f8   :  { %409 = vadd.xlane.f32.xlu0 %v408_v5 }
 0x2fc   :  { %415 = vadd.xlane.f32.xlu0 %v414_v7 }
 0x35d   :  { %v419_v8 = vpop.xlane.xlu1 %418 }
 0x35e   :  { %582 = vrcp.f32 %v419_v8 }
 0x361   :  { %v425_v9 = vpop.xlane.xlu1 %424 }
 0x365   :  { %v431_v10 = vpop.xlane.xlu1 %430 }
 0x369   :  { %v422_v11 = vpop.xlane.xlu1 %421 }
 0x36a   :  { %584 = vrcp.f32 %v422_v11 }
 0x36b   :  { %586 = vrcp.f32 %v425_v9  ;;  %v583_v19 = vpop.eup %582 }
 0x36d   :  { %v428_v12 = vpop.xlane.xlu0 %427  ;;  %v437_v13 = vpop.xlane.xlu1 %436 }
 0x36e   :  { %588 = vrcp.f32 %v428_v12 }
 0x36f   :  { %590 = vrcp.f32 %v431_v10 }
 0x371   :  { %v434_v14 = vpop.xlane.xlu0 %433  ;;  %v395_v15 = vpop.xlane.xlu1 %394 }
 0x372   :  { %592 = vrcp.f32 %v434_v14  ;;  %v449_v21 = vmul.f32 %v583_v19, %v395_v15 }
 0x373   :  { %594 = vrcp.f32 %v437_v13 }
 0x374   :  { %v470_v29 = vrot.slane %v449_v21, %v469_v20 }
 0x375   :  { %v440_v17 = vpop.xlane.xlu0 %439  ;;  %v401_v18 = vpop.xlane.xlu1 %400 }
 0x376   :  { %596 = vrcp.f32 %v440_v17 }
 0x377   :  { %v585_v22 = vpop.eup %584 }
 0x378   :  { %v587_v24 = vpop.eup %586 }
 0x379   :  { %v398_v23 = vpop.xlane.xlu0 %397  ;;  %v407_v25 = vpop.xlane.xlu1 %406  ;;  %v451_v26 = vmul.f32 %v587_v24, %v401_v18 }
 0x37a   :  { %v450_v0 = vmul.f32 %v585_v22, %v398_v23 }
 0x37b   :  { %v589_v31 = vpop.eup %588  ;;  %v478_v35 = vrot.slane %v451_v26, %v469_v20 }
 0x37c   :  { %v474_v30 = vrot.slane %v450_v0, %v469_v20  ;;  %v591_v32 = vpop.eup %590 }
 0x37d   :  { %v404_v27 = vpop.xlane.xlu0 %403  ;;  %v453_v36 = vmul.f32 %v591_v32, %v407_v25  ;;  %v413_v37 = vpop.xlane.xlu1 %412 }
 0x37e   :  { %v500_v33 = vsel %vm499_vm4, %v474_v30, %v470_v29  ;;  %v452_v34 = vmul.f32 %v589_v31, %v404_v27 }
 0x37f   :  { %v593_v38 = vpop.eup %592  ;;  %v502_v39 = vsel %vm501_vm5, %v478_v35, %v500_v33  ;;  %v486_v44 = vrot.slane %v453_v36, %v469_v20 }
 0x380   :  { %v482_v28 = vrot.slane %v452_v34, %v469_v20  ;;  %v595_v41 = vpop.eup %594 }
 0x381   :  { %v410_v40 = vpop.xlane.xlu0 %409  ;;  %v455_v45 = vmul.f32 %v595_v41, %v413_v37 }
 0x382   :  { %v504_v42 = vsel %vm503_vm6, %v482_v28, %v502_v39  ;;  %v454_v43 = vmul.f32 %v593_v38, %v410_v40 }
 0x383   :  { %v597_v47 = vpop.eup %596  ;;  %v506_v48 = vsel %vm505_vm7, %v486_v44, %v504_v42  ;;  %v494_v52 = vrot.slane %v455_v45, %v469_v20 }
 0x384   :  { %v490_v46 = vrot.slane %v454_v43, %v469_v20 }
 0x385   :  { %v416_v49 = vpop.xlane.xlu0 %415 }
 0x386   :  { %v508_v50 = vsel %vm507_vm8, %v490_v46, %v506_v48  ;;  %v456_v51 = vmul.f32 %v597_v47, %v416_v49 }
 0x387   :  { %v510_v54 = vsel %vm509_vm9, %v494_v52, %v508_v50 }
 0x388   :  { %v498_v53 = vrot.slane %v456_v51, %v469_v20 }
 0x38a   :  { %v512_v55 = vsel %vm511_vm10, %v498_v53, %v510_v54 }
 0x38b   :  { %v515_v56 = vsel %vm514_vm11, %v512_v55, 0.0 }
 0x38c   :  { %516 = vst [vmem:[#allocation8] sm:$0xff] %v515_v56 }
 0x38d   :  { %669 = shalt.err (!%p666_p5)
}
 0x38e   :  { %526 = dma.vmem_to_hbm [thread:$0]  %s524_s18, 128, %s802_s6, [#allocation4]  }
 0x38f   :  { %682 = dma.done.wait [#allocation4], 128  }
 0x390   :  { %683 = vsyncadd [#allocation4], 4294967168 }
 0x391   :  { %530 = vsyncpa [#allocation3], 1 }
 0x392   :  { %531 = vsyncpa [#allocation6], 1 }
 0x393   :  { %532 = vsyncpa [#allocation4], 1 }

</bundles_post_ra>
